<compile_context>
chip_gen: v6e
topology: v6e:2x2x1
jax: 0.10.0
libtpu: 0.0.40
codegen_flags: <defaults>
</compile_context>

<pallas_src>
import jax
import jax.numpy as jnp
from jax.experimental import pallas as pl
from jax.experimental.pallas import tpu as pltpu


def _outconv_kernel(w_ref, b_ref, x_ref, o_ref):
    # w_ref: (C_out, C_in)        grid-invariant, VMEM-resident
    # b_ref: (C_out, 1) f32       grid-invariant, VMEM-resident
    # x_ref: (NB, C_in, ts)       spatial on lanes, channels on sublanes
    # o_ref: (NB, C_out, ts)      lane-dense output block
    nb, c_in, _ = x_ref.shape
    c_out = o_ref.shape[1]
    x = x_ref[...]

    if c_in * c_out <= 1024:
        # Tiny contraction (e.g. 3x4): MXU would be >95% padding and any
        # operand-layout fixup of the big spatial tile costs XLU/VMEM traffic
        # on the memory-bound critical path. VPU broadcast-FMA is ~C_in VALU
        # ops per output vreg -- free under the DMA.
        w = w_ref[...].astype(jnp.float32)          # (C_out, C_in)
        xf = x.astype(jnp.float32)                  # (NB, C_in, ts)
        acc = w[:, 0:1][None, :, :] * xf[:, 0:1, :]            # (NB, C_out, ts)
        for k in range(1, c_in):
            acc = acc + w[:, k:k + 1][None, :, :] * xf[:, k:k + 1, :]
        o_ref[...] = (acc + b_ref[...][None, :, :]).astype(o_ref.dtype)
    else:
        # Larger channel counts: per-image MXU matmul; no transposes of the
        # large (C_in, ts) tile (spatial stays on lanes on both operands).
        for n in range(nb):
            acc = jnp.dot(w_ref[...], x[n], preferred_element_type=jnp.float32)
            o_ref[n] = (acc + b_ref[...]).astype(o_ref.dtype)


def _vmem_capacity_bytes():
    try:
        cap = getattr(pltpu.get_tpu_info(), "vmem_capacity_bytes", None)
        if cap:
            return int(cap)
    except Exception:
        pass
    return 64 * 1024 * 1024  # conservative fallback (v7x per-TC VMEM)


def outconv_1x1(x_nchw, weight, bias, *, ts=None):
    """1x1 Conv2d forward, equivalent to nn.Conv2d(C_in, C_out, kernel_size=1).

    x_nchw: (N, C_in, H, W); weight: (C_out, C_in, 1, 1); bias: (C_out,)
    returns (N, C_out, H, W)
    """
    N, C_in, H, W = x_nchw.shape
    C_out = weight.shape[0]
    HW = H * W
    itemsize = jnp.dtype(x_nchw.dtype).itemsize

    # Free reshapes only (trailing contiguous dims): no transposes, no padding.
    x3 = x_nchw.reshape(N, C_in, HW)                      # (N, C_in, HW)
    w_mat = weight.reshape(C_out, C_in)                   # (C_out, C_in)
    b_col = bias.reshape(C_out, 1).astype(jnp.float32)    # f32 once in wrapper

    # --- Generation-aware VMEM budgets -------------------------------------
    # v5e/v6e: 128 MiB physical -> tile budget 32 MiB, scoped limit 64 MiB.
    # v7x:      64 MiB physical -> tile budget 16 MiB, scoped limit 32 MiB.
    vmem_cap = _vmem_capacity_bytes()
    tile_budget = min(vmem_cap // 4, 32 * 1024 * 1024)
    vmem_limit = min(vmem_cap // 2, 64 * 1024 * 1024)

    # Bytes per spatial column per image: double-buffered in+out VMEM tiles at
    # the REAL itemsize, plus f32 working temps inside the kernel body.
    per_col = 2 * (C_in + C_out) * itemsize + (C_in + 2 * C_out) * 4

    ts_cap = max(128, (tile_budget // per_col) // 128 * 128)
    ts_eff = ts_cap if ts is None else min(int(ts), ts_cap)
    ts_eff = max(128, (ts_eff // 128) * 128)

    # --- Grid / block plan ---------------------------------------------------
    spatial_path = HW > ts_eff
    nb = 1
    if not spatial_path:
        # Small images: batch several images into one contiguous (NB,C_in,HW)
        # slab per step to amortize the fixed per-step cost.
        nb = max(1, min(N, tile_budget // max(1, per_col * HW)))
        if N > 1:
            nb = min(nb, -(-N // 2))      # keep >= 2 grid steps (v7x megacore)
        if N == 1 and HW >= 256:
            # Single image, single tile: split spatially so both v7x TCs work.
            spatial_path = True
            ts_eff = max(128, (HW // 2) // 128 * 128)

    if spatial_path:
        grid = (N, pl.cdiv(HW, ts_eff))
        in_specs = [
            pl.BlockSpec((C_out, C_in), lambda n, s: (0, 0)),
            pl.BlockSpec((C_out, 1), lambda n, s: (0, 0)),
            pl.BlockSpec((1, C_in, ts_eff), lambda n, s: (n, 0, s)),
        ]
        out_specs = pl.BlockSpec((1, C_out, ts_eff), lambda n, s: (n, 0, s))
        dims = ("parallel", "parallel")
    else:
        grid = (pl.cdiv(N, nb),)
        in_specs = [
            pl.BlockSpec((C_out, C_in), lambda i: (0, 0)),
            pl.BlockSpec((C_out, 1), lambda i: (0, 0)),
            pl.BlockSpec((nb, C_in, HW), lambda i: (i, 0, 0)),
        ]
        out_specs = pl.BlockSpec((nb, C_out, HW), lambda i: (i, 0, 0))
        dims = ("parallel",)

    cost = pl.CostEstimate(
        flops=2 * N * C_out * C_in * HW,
        transcendentals=0,
        bytes_accessed=(N * (C_in + C_out) * HW) * itemsize
        + C_out * C_in * jnp.dtype(w_mat.dtype).itemsize
        + C_out * 4,
    )

    out3 = pl.pallas_call(
        _outconv_kernel,
        out_shape=jax.ShapeDtypeStruct((N, C_out, HW), x_nchw.dtype),
        grid_spec=pltpu.PrefetchScalarGridSpec(
            num_scalar_prefetch=0,
            grid=grid,
            in_specs=in_specs,
            out_specs=out_specs,
        ),
        compiler_params=pltpu.CompilerParams(
            dimension_semantics=dims,
            vmem_limit_bytes=vmem_limit,
        ),
        cost_estimate=cost,
    )(w_mat, b_col, x3)

    return out3.reshape(N, C_out, H, W)


if __name__ == "__main__":
    # Small shapes consistent with the module.
    N, C_in, H, W = 2, 4, 16, 16
    C_out = 3

    key = jax.random.PRNGKey(0)
    kx, kw, kb = jax.random.split(key, 3)

    x = jax.random.normal(kx, (N, C_in, H, W), dtype=jnp.float32)

    # Deterministic init matching nn.Conv2d param shapes.
    fan_in = C_in * 1 * 1
    bound = 1.0 / (fan_in ** 0.5)
    weight = jax.random.uniform(kw, (C_out, C_in, 1, 1), jnp.float32,
                                minval=-bound, maxval=bound)
    bias = jax.random.uniform(kb, (C_out,), jnp.float32,
                              minval=-bound, maxval=bound)

    out = outconv_1x1(x, weight, bias)
    out = jax.block_until_ready(out)

    # Reference: plain-JAX 1x1 conv (NCHW semantics).
    ref = jnp.einsum("nihw,oi->nohw", x, weight.reshape(C_out, C_in)) \
        + bias.reshape(1, C_out, 1, 1)

    assert out.shape == (N, C_out, H, W)
    assert jnp.allclose(out, ref, atol=1e-5, rtol=1e-5)
    print("KERNEL_OK")
</pallas_src>

<mosaic_0001>
module attributes {stable_mosaic.version = 11 : i64} {
  func.func @_outconv_kernel(%arg0: i32, %arg1: memref<3x4xf32, #tpu.memory_space<vmem>>, %arg2: memref<3x1xf32, #tpu.memory_space<vmem>>, %arg3: memref<1x4x256xf32, #tpu.memory_space<vmem>>, %arg4: memref<1x3x256xf32, #tpu.memory_space<vmem>>) attributes {dimension_semantics = [#tpu.dimension_semantics<parallel>], iteration_bounds = array<i64: 2>, scalar_prefetch = 0 : i64, scratch_operands = 0 : i64, tpu.core_type = #tpu.core_type<tc>, window_params = [{pipeline_mode = #tpu.pipeline_mode<synchronous>, transform_indices = @transform_0, window_bounds = array<i64: 3, 4>}, {pipeline_mode = #tpu.pipeline_mode<synchronous>, transform_indices = @transform_1, window_bounds = array<i64: 3, 1>}, {transform_indices = @transform_2, window_bounds = array<i64: 1, 4, 256>}, {transform_indices = @transform_3, window_bounds = array<i64: 1, 3, 256>}]} {
    %c0 = arith.constant 0 : index
    %c0_0 = arith.constant 0 : index
    %c0_1 = arith.constant 0 : index
    %0 = vector.load %arg3[%c0, %c0_0, %c0_1] : memref<1x4x256xf32, #tpu.memory_space<vmem>>, vector<1x4x256xf32>
    %c0_2 = arith.constant 0 : index
    %c0_3 = arith.constant 0 : index
    %1 = vector.load %arg1[%c0_2, %c0_3] : memref<3x4xf32, #tpu.memory_space<vmem>>, vector<3x4xf32>
    %2 = vector.extract_strided_slice %1 {offsets = [0, 0], sizes = [3, 1], strides = [1, 1]} : vector<3x4xf32> to vector<3x1xf32>
    %3 = vector.shape_cast %2 : vector<3x1xf32> to vector<1x3x1xf32>
    %4 = vector.extract_strided_slice %0 {offsets = [0, 0, 0], sizes = [1, 1, 256], strides = [1, 1, 1]} : vector<1x4x256xf32> to vector<1x1x256xf32>
    %5 = vector.broadcast %3 : vector<1x3x1xf32> to vector<1x3x256xf32>
    %6 = vector.broadcast %4 : vector<1x1x256xf32> to vector<1x3x256xf32>
    %7 = arith.mulf %5, %6 : vector<1x3x256xf32>
    %8 = vector.extract_strided_slice %1 {offsets = [0, 1], sizes = [3, 1], strides = [1, 1]} : vector<3x4xf32> to vector<3x1xf32>
    %9 = vector.shape_cast %8 : vector<3x1xf32> to vector<1x3x1xf32>
    %10 = vector.extract_strided_slice %0 {offsets = [0, 1, 0], sizes = [1, 1, 256], strides = [1, 1, 1]} : vector<1x4x256xf32> to vector<1x1x256xf32>
    %11 = vector.broadcast %9 : vector<1x3x1xf32> to vector<1x3x256xf32>
    %12 = vector.broadcast %10 : vector<1x1x256xf32> to vector<1x3x256xf32>
    %13 = arith.mulf %11, %12 : vector<1x3x256xf32>
    %14 = arith.addf %7, %13 : vector<1x3x256xf32>
    %15 = vector.extract_strided_slice %1 {offsets = [0, 2], sizes = [3, 1], strides = [1, 1]} : vector<3x4xf32> to vector<3x1xf32>
    %16 = vector.shape_cast %15 : vector<3x1xf32> to vector<1x3x1xf32>
    %17 = vector.extract_strided_slice %0 {offsets = [0, 2, 0], sizes = [1, 1, 256], strides = [1, 1, 1]} : vector<1x4x256xf32> to vector<1x1x256xf32>
    %18 = vector.broadcast %16 : vector<1x3x1xf32> to vector<1x3x256xf32>
    %19 = vector.broadcast %17 : vector<1x1x256xf32> to vector<1x3x256xf32>
    %20 = arith.mulf %18, %19 : vector<1x3x256xf32>
    %21 = arith.addf %14, %20 : vector<1x3x256xf32>
    %22 = vector.extract_strided_slice %1 {offsets = [0, 3], sizes = [3, 1], strides = [1, 1]} : vector<3x4xf32> to vector<3x1xf32>
    %23 = vector.shape_cast %22 : vector<3x1xf32> to vector<1x3x1xf32>
    %24 = vector.extract_strided_slice %0 {offsets = [0, 3, 0], sizes = [1, 1, 256], strides = [1, 1, 1]} : vector<1x4x256xf32> to vector<1x1x256xf32>
    %25 = vector.broadcast %23 : vector<1x3x1xf32> to vector<1x3x256xf32>
    %26 = vector.broadcast %24 : vector<1x1x256xf32> to vector<1x3x256xf32>
    %27 = arith.mulf %25, %26 : vector<1x3x256xf32>
    %28 = arith.addf %21, %27 : vector<1x3x256xf32>
    %c0_4 = arith.constant 0 : index
    %c0_5 = arith.constant 0 : index
    %29 = vector.load %arg2[%c0_4, %c0_5] : memref<3x1xf32, #tpu.memory_space<vmem>>, vector<3x1xf32>
    %30 = vector.shape_cast %29 : vector<3x1xf32> to vector<1x3x1xf32>
    %31 = vector.broadcast %30 : vector<1x3x1xf32> to vector<1x3x256xf32>
    %32 = arith.addf %28, %31 : vector<1x3x256xf32>
    %c0_6 = arith.constant 0 : index
    %c0_7 = arith.constant 0 : index
    %c0_8 = arith.constant 0 : index
    %33 = vector.load %arg4[%c0_6, %c0_7, %c0_8] : memref<1x3x256xf32, #tpu.memory_space<vmem>>, vector<1x3x256xf32>
    tpu.vector_store %arg4[%c0_6, %c0_7, %c0_8], %32 {strides = array<i32>} : memref<1x3x256xf32, #tpu.memory_space<vmem>>, vector<1x3x256xf32>,
    return
  }
  func.func @transform_0(%arg0: i32) -> (i32, i32) {
    %c0_i32 = arith.constant 0 : i32
    %c0_i32_0 = arith.constant 0 : i32
    %c0_i32_1 = arith.constant 0 : i32
    return %c0_i32, %c0_i32_0 : i32, i32
  }
  func.func @transform_1(%arg0: i32) -> (i32, i32) {
    %c0_i32 = arith.constant 0 : i32
    %c0_i32_0 = arith.constant 0 : i32
    %c0_i32_1 = arith.constant 0 : i32
    return %c0_i32, %c0_i32_0 : i32, i32
  }
  func.func @transform_2(%arg0: i32) -> (i32, i32, i32) {
    %c0_i32 = arith.constant 0 : i32
    %c0_i32_0 = arith.constant 0 : i32
    %c0_i32_1 = arith.constant 0 : i32
    return %arg0, %c0_i32, %c0_i32_0 : i32, i32, i32
  }
  func.func @transform_3(%arg0: i32) -> (i32, i32, i32) {
    %c0_i32 = arith.constant 0 : i32
    %c0_i32_0 = arith.constant 0 : i32
    %c0_i32_1 = arith.constant 0 : i32
    return %arg0, %c0_i32, %c0_i32_0 : i32, i32, i32
  }
}

</mosaic_0001>

<bundles_post_ra>
// kernel: tpu_custom_call.1
= control target key start
LH: loop header
LB: loop body
LE: loop exit
PB: predicated region body
PF: predicated region fallthrough
CT: control target
= control target key end

     0   :  { %8 = vsyncpa [#allocation3], 0  ;;  %s633_s0 = inlined_call_operand.vmem [shape: f32[3,4], index: 0, kind: input, shape index: {}]   ;;  %s634_s1 = inlined_call_operand.vmem [shape: f32[3,1], index: 1, kind: input, shape index: {}]   ;;  %s635_s2 = inlined_call_operand.hbm [shape: f32[2,4,256], index: 2, kind: input, shape index: {}]   ;;  %s636_s3 = inlined_call_operand.vmem [shape: f32[2,3,256], index: 3, kind: output, shape index: {}]  }
   0x1   :  { %10 = vsyncpa [#allocation3 + $0x1], 0  ;;  %s527_s12 = smov 0   ;;  %s529_s13 = smov 0  }
   0x2   :  { %s531_s14 = smov 0   ;;  %s533_s15 = smov 0  }
   0x3 LB: > { %s546_s16 = sadd.s32 4294967295, %s500_s15   ;;  %s549_s17 = sadd.s32 1, %s500_s15   ;;  %s500_s15 = sphi %s533_s15, %s646_s15   ;;  %s496_s14 = sphi %s531_s14, %s645_s14   ;;  %s492_s13 = sphi %s529_s13, %s644_s13   ;;  %s488_s12 = sphi %s527_s12, %s643_s12  }
   0x4   : > { %s62_s18 = ssub.s32 %s500_s15, %s549_s17  ;;  %s65_s19 = sadd.s32 1, %s496_s14 }
   0x5   : > { %p63_p0 = scmp.eq.s32.totalorder %s62_s18, 0  ;;  %p72_p1 = scmp.ne.s32.totalorder %s496_s14, %s492_s13 }
   0x6   : > { %p73_p2 = scmp.eq.s32.totalorder %s500_s15, 0  ;;  %p78_p3 = scmp.ne.s32.totalorder %s492_s13, %s488_s12 }
   0x7   : > { %s559_s20 = scalar_select %p63_p0, %s496_s14, %s65_s19  }
   0x8   : > { %p74_p4 = por %p73_p2, %p72_p1  ;;  %p79_p5 = scmp.eq.s32.totalorder %s546_s16, 0 }
   0x9   : > { %p395_p6 = scmp.lt.s32.totalorder %s500_s15, 2  ;;  %s134_s22 = sand.u32 1, %s496_s14  }
   0xa   : > { %p563_p7 = por %p79_p5, %p78_p3  ;;  %s378_s23 = sshll.u32 %s134_s22, 3 }
   0xb   : > { %s387_s24 = sshll.u32 %s500_s15, 7  ;;  %s138_s28 = scalar_lea.vmem [#allocation2], %s378_s23 }
   0xc   : > { %s638_s21 = scalar_select %p563_p7, 1, 0 }
   0xd   : > { %s572_s27 = scalar_lea.hbm %s635_s2, %s387_s24  ;;  %s146_s29 = sshll.u32 %s138_s28, 4  ;;  %s574_s29 = int_to_ptr.vmem [resolvable:$true] %s146_s29 }
   0xe   : > { %p576_p8 = pnand %p395_p6, %p74_p4  ;;  %s135_s4 = scalar_lea.sflag [#allocation3], %s134_s22 }
   0xf   : > { %s438_s5 = scalar_lea.hbm %s572_s27, 128  ;;  %s443_s8 = scalar_lea.hbm %s635_s2, 256 }
  0x10   : > { %p439_p11 = scmp.ne.s32.totalorder %s572_s27, %s438_s5  ;;  %p440_p12 = pneg %p576_p8 }
  0x11   : > { %p444_p1 = scmp.lt.s32.totalorder %s572_s27, %s635_s2  ;;  %p445_p2 = scmp.lt.s32.totalorder %s443_s8, %s438_s5 }
  0x12   : > { %p441_p13 = pnand %p440_p12, %p439_p11 }
  0x13   : > { %p446_p3 = por %p445_p2, %p444_p1 }
  0x14   : > { %p442_p0 = pneg %p441_p13 }
  0x16   : > { %p447_p4 = pnand %p446_p3, %p442_p0 }
  0x18   : > { %450 = shalt.err (!%p447_p4)
}
  0x19   : > { %s451_s11 = scalar_lea.vmem %s574_s29, 128  ;;  %s502_s12 = smov [#allocation2]  }
  0x1a   : > { %p452_p5 = scmp.ne.s32.totalorder %s574_s29, %s451_s11  ;;  %s456_s18 = sshll.u32 %s502_s12, 4  ;;  %s457_s18 = int_to_ptr.vmem [resolvable:$false] %s456_s18 }
  0x1b   : > { %s458_s19 = scalar_lea.vmem %s457_s18, 256  ;;  %p459_p13 = scmp.lt.s32.totalorder %s574_s29, %s457_s18 }
  0x1c   : > { %p454_p6 = pnand %p452_p5, %p440_p12  ;;  %p460_p9 = scmp.lt.s32.totalorder %s458_s19, %s451_s11 }
  0x1e   : > { %p455_p11 = pneg %p454_p6  ;;  %p461_p10 = por %p460_p9, %p459_p13 }
  0x20   : > { %p462_p7 = pnand %p461_p10, %p455_p11 }
  0x22   : > { %465 = shalt.err (!%p462_p7)
}
  0x23   : > { %394 = dma.hbm_to_vmem [thread:$0]  (!%p576_p8), %s572_s27, 128, %s574_s29, %s135_s4  }
  0x24   : > { %p640_p0 = scmp.lt.s32.totalorder %s500_s15, 3  ;;  %p641_p1 = scmp.ge.s32.totalorder %s500_s15, 1 }
  0x26   : > { %p152_p12 = pnand %p641_p1, %p640_p0 }
  0x27   : > { %s157_s22 = sand.u32 (!%p152_p12), 1, %s492_s13   ;;  %p642_p9 = scmp.ne.s32.totalorder (!%p152_p12), %s638_s21, 0 }
  0x28   : > { %155 = sbr.rel (%p152_p12) target bundleno = 190 (0xbe), region = 32  ;;  %s382_s23 = sshll.u32 (!%p152_p12), %s157_s22, 3 }
  0x29   : > { %s158_s24 = scalar_lea.sflag (!%p152_p12), [#allocation3], %s157_s22  ;;  %s161_s25 = scalar_lea.vmem (!%p152_p12), [#allocation2], %s382_s23 }
  0x2d   : > { %483 = dma.done.wait (%p642_p9), %s158_s24, 128  }
  0x2e   : > { %485 = vsyncadd (%p642_p9), %s158_s24, 4294967168  ;;  %v503_v0 = vmov 0   ;;  %v504_v1 = vmov 2   ;;  %v190_v2 = vld [vmem:[%s633_s0] sm:$0x7]  ;;  %v505_v3 = vmov 1   ;;  %v197_v6 = vlaneseq }
  0x2f   : > { %432 = vset.pattern.permute.xlu0 %v503_v0  ;;  %434 = vset.pattern.permute.xlu1 %v504_v1  ;;  %v506_v4 = vmov 3   ;;  %v295_v5 = vld [vmem:[%s634_s1] sm:$0x7]  ;;  %p184_p7 = scmp.lt.s32.totalorder %s546_s16, 1 }
  0x30   : > { %193 = vperm.xlu0 %432, %v190_v2   ;;  %244 = vperm.xlu1 %434, %v190_v2   ;;  %v198_v7 = vshrl.u32 %v197_v6, 7  ;;  %v189_v12 = vld [vmem:[%s161_s25] sm:$0xff] }
  0x31   : > { %s648_s16 = smov (!%p184_p7, %s546_s16), 1 }
  0x32   : > { %v199_v8 = vsub.s32 0, %v198_v7  ;;  %v203_v9 = vsub.s32 4, %v198_v7  ;;  %v223_v10 = vsub.s32 1, %v198_v7  ;;  %v227_v11 = vsub.s32 5, %v198_v7  ;;  %s388_s21 = sshll.u32 %s648_s16, 3 }
  0x33   : > { %v249_v13 = vsub.s32 2, %v198_v7  ;;  %v253_v14 = vsub.s32 6, %v198_v7  ;;  %v275_v15 = vsub.s32 3, %v198_v7  ;;  %v279_v16 = vsub.s32 7, %v198_v7  ;;  %s188_s4 = scalar_lea.vmem %s636_s3, %s388_s21 }
  0x34   : > { %433 = vset.pattern.permute.xlu0 %v505_v3  ;;  %435 = vset.pattern.permute.xlu1 %v506_v4  ;;  %v200_v17 = vrot.slane %v189_v12, %v199_v8  ;;  %v204_v18 = vrot.slane %v189_v12, %v203_v9  ;;  %v224_v19 = vrot.slane %v189_v12, %v223_v10 }
  0x35   : > { %218 = vperm.xlu0 %433, %v190_v2   ;;  %270 = vperm.xlu1 %435, %v190_v2   ;;  %v228_v20 = vrot.slane %v189_v12, %v227_v11  ;;  %v250_v21 = vrot.slane %v189_v12, %v249_v13  ;;  %v254_v22 = vrot.slane %v189_v12, %v253_v14 }
  0x36   : > { %v276_v25 = vrot.slane %v189_v12, %v275_v15  ;;  %v280_v26 = vrot.slane %v189_v12, %v279_v16  ;;  %v210_v27 = vrot.slane %v200_v17, %v199_v8  ;;  %v214_v28 = vrot.slane %v204_v18, %v199_v8 }
  0x37   : > { %v234_v29 = vrot.slane %v224_v19, %v223_v10  ;;  %v238_v30 = vrot.slane %v228_v20, %v223_v10  ;;  %v260_v31 = vrot.slane %v250_v21, %v249_v13  ;;  %v264_v32 = vrot.slane %v254_v22, %v249_v13 }
  0x38   : > { %v286_v33 = vrot.slane %v276_v25, %v275_v15  ;;  %v290_v34 = vrot.slane %v280_v26, %v275_v15 }
  0x39   : > { %436 = vset.pattern.permute.xlu1 %v503_v0  ;;  %437 = vset.pattern.permute.xlu0 %v503_v0 }
  0x3a   : > { %298 = vperm.xlu1 %436, %v295_v5  }
  0xab   : > { %v194_v23 = vpop.permute.xlu0 %193  ;;  %v245_v24 = vpop.permute.xlu1 %244 }
  0xac   : > { %v215_v37 = vmul.f32 %v210_v27, %v194_v23  ;;  %v216_v38 = vmul.f32 %v214_v28, %v194_v23  ;;  %v265_v41 = vmul.f32 %v260_v31, %v245_v24  ;;  %v266_v42 = vmul.f32 %v264_v32, %v245_v24 }
  0xb0   : > { %v219_v35 = vpop.permute.xlu0 %218  ;;  %v271_v36 = vpop.permute.xlu1 %270 }
  0xb1   : > { %v239_v39 = vmul.f32 %v234_v29, %v219_v35  ;;  %v240_v40 = vmul.f32 %v238_v30, %v219_v35  ;;  %v291_v45 = vmul.f32 %v286_v33, %v271_v36  ;;  %v292_v46 = vmul.f32 %v290_v34, %v271_v36 }
  0xb3   : > { %v241_v43 = vadd.f32 %v239_v39, %v215_v37  ;;  %v242_v44 = vadd.f32 %v240_v40, %v216_v38 }
  0xb5   : > { %v267_v47 = vadd.f32 %v265_v41, %v241_v43  ;;  %v268_v48 = vadd.f32 %v266_v42, %v242_v44  ;;  %v299_v49 = vpop.permute.xlu1 %298 }
  0xb7   : > { %v293_v50 = vadd.f32 %v291_v45, %v267_v47  ;;  %v294_v51 = vadd.f32 %v292_v46, %v268_v48 }
  0xb9   : > { %v301_v52 = vadd.f32 %v299_v49, %v293_v50  ;;  %v302_v53 = vadd.f32 %v299_v49, %v294_v51 }
  0xbb   : > { %v305_v54 = vcombine.low %v301_v52, %v302_v53 }
  0xbd   : > { %307 = vst [vmem:[%s188_s4] sm:$0x77] %v305_v54 }
  0xbe PF: > { %p13_p8 = scmp.ge.s32.totalorder %s549_s17, 4   ;;  %s643_s12 = smov %s492_s13 }
  0xbf   : > { %s644_s13 = smov %s496_s14  ;;  %s645_s14 = smov %s559_s20 }
  0xc0   : > { %s646_s15 = smov %s549_s17  ;;  %15 = sbr.rel (!%p13_p8) target bundleno = 3 (0x3), region = 72 }
  0xc5   :  { %329 = vsyncpa [#allocation3], 1 }
  0xc6   :  { %331 = vsyncpa [#allocation3 + $0x1], 1 }

</bundles_post_ra>
